<compile_context>
chip_gen: v7x
topology: tpu7x:2x2x1
jax: 0.10.0
libtpu: 0.0.40
codegen_flags: <defaults>
</compile_context>

<pallas_src>
import functools

import jax
import jax.numpy as jnp
from jax import lax
from jax.experimental import pallas as pl
from jax.experimental.pallas import tpu as pltpu


# ----------------------------- small helpers ---------------------------------

def _pad_rows(rows, itemsize):
    """Sublane-padded row count for a VMEM tile of this dtype."""
    pack = max(1, 4 // max(itemsize, 1))
    sub = 8 * pack
    return -(-rows // sub) * sub


def _block_lane_bytes(rows, itemsize):
    """Per-lane VMEM bytes of one (rows, tile) block incl. sublane padding."""
    return _pad_rows(rows, itemsize) * itemsize


def _pick_tile(hw, lane_bytes, budget_bytes=8 << 20, max_tile=16384):
    """Largest multiple-of-128 divisor of `hw` (capped at `max_tile`) such that
    the estimated per-step VMEM footprint stays within `budget_bytes`.
    `lane_bytes` must already include double-buffering of streamed inputs and
    the (sublane padded) accumulator.  Sized with ample headroom vs the 32 MiB
    scoped-VMEM limit requested explicitly below (safe on v5e/v6e/v7x)."""
    if hw % 128 != 0:
        return hw                      # single full-row block (always legal)
    cap = (budget_bytes // max(lane_bytes, 1)) // 128 * 128
    cap = max(128, min(cap, max_tile, hw))
    best = 128
    for t in range(128, cap + 1, 128):
        if hw % t == 0:
            best = t
    return best


_COMPILER_PARAMS = pltpu.CompilerParams(
    dimension_semantics=("parallel", "arbitrary"),
    vmem_limit_bytes=32 * 1024 * 1024,
)


# --------------------------------- kernels ------------------------------------

def _dice_kernel(seg_ref, lbl_ref, out_ref, acc_ref):
    """Per-sample lane partials for dice(F.softmax(seg,1)[:,1:], one_hot(lbl)[:,1:]).

    Blocks: seg (1, C, T) logits (any float dtype), lbl (1, 1, T) int32.
    acc (3, T) f32 holds lane partials of [sum p*t, sum p*p, sum t*t]; the three
    rows are updated with a single fused add/store per tile.  Finalize collapses
    lanes and writes the three per-sample sums broadcast to a (1, 3, 128) block.
    The f32 one-hot target is never materialized in HBM.
    """
    @pl.when(pl.program_id(1) == 0)
    def _init():
        acc_ref[...] = jnp.zeros_like(acc_ref)

    x = seg_ref[0].astype(jnp.float32)                   # (C, T)
    lbl = lbl_ref[0]                                     # (1, T) int32

    # channel softmax; approx reciprocal keeps the normalize on the EUP slot.
    m = jnp.max(x, axis=0, keepdims=True)
    e = jnp.exp(x - m)
    z = jnp.sum(e, axis=0, keepdims=True)
    p = e * pl.reciprocal(z, approx=True)                # (C, T)

    ch = lax.broadcasted_iota(jnp.int32, p.shape, 0)     # channel index
    onehot_fg = jnp.where((ch == lbl) & (ch > 0), 1.0, 0.0)   # fg one-hot target
    fg_ch = (ch > 0).astype(jnp.float32)                 # drop background channel

    a_part = jnp.sum(p * onehot_fg, axis=0, keepdims=True)    # (1, T)
    b_part = jnp.sum(p * p * fg_ch, axis=0, keepdims=True)    # (1, T)
    c_part = (lbl > 0).astype(jnp.float32)                    # (1, T)

    # single dense read-modify-write of all three partial rows
    acc_ref[...] += jnp.concatenate([a_part, b_part, c_part], axis=0)

    @pl.when(pl.program_id(1) == pl.num_programs(1) - 1)
    def _fin():
        sums = jnp.sum(acc_ref[...], axis=-1, keepdims=True)  # (3, 1)
        out_ref[...] = jnp.broadcast_to(sums[None, :, :], (1, 3, 128))


def _kl_att_kernel(t_ref, *args, num_students, inv_temp):
    """Fused KL distillation for one direction and one batch sample.

    Inputs: teacher block (1, C, T) + `num_students` student blocks (1, C, T).
    The teacher softmax and log-softmax come from ONE exp:
        e = exp(t-m); Z = sum(e); q = e*recip(Z); log_q = (t-m) - log(Z).
    Everything is channel-reduced per tile and accumulated into a single
    (1, T) lane partial of  n*sum_c(q*log q) - sum_s sum_c(q*log p_s),
    so the accumulator RMW is one dense row.  Finalize writes the
    un-normalized per-sample KL sum, broadcast over 128 lanes.
    """
    s_refs = args[:num_students]
    out_ref = args[num_students]
    acc_ref = args[num_students + 1]

    @pl.when(pl.program_id(1) == 0)
    def _init():
        acc_ref[...] = jnp.zeros_like(acc_ref)

    t = t_ref[0].astype(jnp.float32)                     # (C, T)
    if inv_temp != 1.0:
        t = t * inv_temp
    m = jnp.max(t, axis=0, keepdims=True)
    tm = t - m
    e = jnp.exp(tm)                                      # the only teacher exp
    z = jnp.sum(e, axis=0, keepdims=True)
    log_z = jnp.log(z)
    q = e * pl.reciprocal(z, approx=True)                # softmax(teacher)
    log_q = tm - log_z                                   # log_softmax(teacher), no log(0)
    qlogq = jnp.sum(q * log_q, axis=0, keepdims=True)    # (1, T)

    qlogp = jnp.zeros_like(qlogq)
    for s_ref in s_refs:                                 # static loop, q reused
        s = s_ref[0].astype(jnp.float32)
        if inv_temp != 1.0:
            s = s * inv_temp
        sm = s - jnp.max(s, axis=0, keepdims=True)
        log_p = sm - jnp.log(jnp.sum(jnp.exp(sm), axis=0, keepdims=True))
        qlogp = qlogp + jnp.sum(q * log_p, axis=0, keepdims=True)

    acc_ref[...] += float(num_students) * qlogq - qlogp  # single dense RMW

    @pl.when(pl.program_id(1) == pl.num_programs(1) - 1)
    def _fin():
        out_ref[...] = jnp.zeros_like(out_ref) + jnp.sum(acc_ref[...])


# ------------------------------ pallas wrappers --------------------------------

def pallas_dice_loss(seg_nchw, label_nhw):
    """dice_loss(F.softmax(seg,1)[:,1:], one_hot(label)[:,1:]) without ever
    materializing the one-hot target.  Streams seg in its native dtype."""
    n, c, h, w = seg_nchw.shape
    hw = h * w
    seg = seg_nchw.reshape(n, c, hw)                     # native dtype (bf16 ok)
    lbl = label_nhw.reshape(n, 1, hw).astype(jnp.int32)

    lane_bytes = (2 * _block_lane_bytes(c, seg.dtype.itemsize)   # seg, dbl-buffered
                  + 2 * _block_lane_bytes(1, 4)                  # label, dbl-buffered
                  + _block_lane_bytes(3, 4))                     # accumulator (padded)
    tile = _pick_tile(hw, lane_bytes)
    n_tiles = hw // tile

    out = pl.pallas_call(
        _dice_kernel,
        grid=(n, n_tiles),
        in_specs=[
            pl.BlockSpec((1, c, tile), lambda i, t: (i, 0, t)),
            pl.BlockSpec((1, 1, tile), lambda i, t: (i, 0, t)),
        ],
        out_specs=pl.BlockSpec((1, 3, 128), lambda i, t: (i, 0, 0)),
        out_shape=jax.ShapeDtypeStruct((n, 3, 128), jnp.float32),
        scratch_shapes=[pltpu.VMEM((3, tile), jnp.float32)],
        compiler_params=_COMPILER_PARAMS,
    )(seg, lbl)

    sums = out[:, :, 0]                                  # (N, 3): [a, b, c]
    a = sums[:, 0]
    b = sums[:, 1] + 0.001
    c_ = sums[:, 2] + 0.001
    return jnp.mean(1.0 - 2.0 * a / (b + c_))


def pallas_kl_att_loss(students, teacher, temperature=1.0):
    """sum_s KLDivLoss('mean')(log_softmax(s/T,1), softmax(teacher/T,1)), fused
    so the teacher block is loaded and its (single-exp) softmax computed once
    per tile for all students."""
    n, c, h, w = teacher.shape
    hw = h * w
    num_students = len(students)
    t_flat = teacher.reshape(n, c, hw)                   # native dtype
    s_flat = [s.reshape(n, c, hw) for s in students]

    lane_bytes = ((num_students + 1) * 2 * _block_lane_bytes(c, t_flat.dtype.itemsize)
                  + _block_lane_bytes(1, 4))             # accumulator
    tile = _pick_tile(hw, lane_bytes)
    n_tiles = hw // tile
    spec = pl.BlockSpec((1, c, tile), lambda i, t: (i, 0, t))

    out = pl.pallas_call(
        functools.partial(_kl_att_kernel, num_students=num_students,
                          inv_temp=1.0 / float(temperature)),
        grid=(n, n_tiles),
        in_specs=[spec] * (num_students + 1),
        out_specs=pl.BlockSpec((1, 1, 128), lambda i, t: (i, 0, 0)),
        out_shape=jax.ShapeDtypeStruct((n, 1, 128), jnp.float32),
        scratch_shapes=[pltpu.VMEM((1, tile), jnp.float32)],
        compiler_params=_COMPILER_PARAMS,
    )(t_flat, *s_flat)

    return jnp.sum(out[:, 0, 0]) / float(n * c * hw)     # KLDivLoss 'mean' per student


def bce_with_logits_mean(logits, targets):
    """nn.BCEWithLogitsLoss() mean reduction.  The (N, num_lanes) tensor is far
    too small to amortize a pallas_call launch; plain XLA fusion is faster."""
    x = logits.astype(jnp.float32)
    t = targets.astype(jnp.float32)
    return jnp.mean(jnp.maximum(x, 0.0) - x * t + jnp.log1p(jnp.exp(-jnp.abs(x))))


# ----------------------------- RESA forward glue -------------------------------

def att_loss(h_att, w_att, temperature=1.0):
    """Matches the PyTorch att_loss: last element of each list is the teacher."""
    loss_h = pallas_kl_att_loss(h_att[:-1], h_att[-1], temperature)
    loss_w = pallas_kl_att_loss(w_att[:-1], w_att[-1], temperature)
    return loss_h + loss_w


def resa_forward(output, batch, cfg):
    """Equivalent of RESA.forward(epoch, net, batch) given net outputs."""
    seg = output['seg']                          # (N, num_classes, H, W) logits
    label = batch['label']                       # (N, H, W) int

    # cfg.loss_type == 'dice_loss'.  The PyTorch code computes the same dice
    # loss twice (seg_loss and dice); compute it once and reuse.
    dice_val = pallas_dice_loss(seg, label)
    seg_loss = dice_val
    dice = dice_val

    loss = seg_loss * cfg['seg_loss_weight'] + dice * 1.5

    loss_att = att_loss(output['h_att'], output['w_att'], temperature=1.0)
    loss = loss + 0.8 * loss_att

    loss_stats = {'seg_loss': seg_loss, 'att_loss': loss_att}

    if 'exist' in output:
        exist_loss = 0.6 * bce_with_logits_mean(output['exist'],
                                                batch['exist'].astype(jnp.float32))
        loss = loss + exist_loss
        loss_stats['exist_loss'] = exist_loss

    return {'loss': loss, 'loss_stats': loss_stats}


# ------------------------------------ main -------------------------------------

if __name__ == "__main__":
    cfg = {'loss_type': 'dice_loss', 'num_classes': 4, 'seg_loss_weight': 1.0}

    N, C, H, W = 2, 4, 16, 16       # batch, classes, spatial
    L = 3                           # attention maps per direction (last = teacher)
    NUM_LANES = 4

    key = jax.random.PRNGKey(0)
    ks = jax.random.split(key, 4 + 2 * L)

    seg = jax.random.normal(ks[0], (N, C, H, W), jnp.float32)
    label = jax.random.randint(ks[1], (N, H, W), 0, C, dtype=jnp.int32)
    exist_logits = jax.random.normal(ks[2], (N, NUM_LANES), jnp.float32)
    exist_labels = jax.random.bernoulli(ks[3], 0.5, (N, NUM_LANES)).astype(jnp.float32)

    h_att = [jax.random.normal(ks[4 + i], (N, C, H, W), jnp.float32) for i in range(L)]
    w_att = [jax.random.normal(ks[4 + L + i], (N, C, H, W), jnp.float32) for i in range(L)]

    output = {'seg': seg, 'h_att': h_att, 'w_att': w_att, 'exist': exist_logits}
    batch = {'label': label, 'exist': exist_labels}

    ret = resa_forward(output, batch, cfg)
    jax.block_until_ready(ret['loss'])
    jax.block_until_ready(ret['loss_stats'])

    # ---- pure-JAX reference check (forward semantics of the PyTorch module) ----
    def _ref_dice(seg, label, num_classes):
        p = jax.nn.softmax(seg, axis=1)[:, 1:]
        t = jnp.transpose(jax.nn.one_hot(label, num_classes, dtype=jnp.float32),
                          (0, 3, 1, 2))[:, 1:]
        p = p.reshape(p.shape[0], -1)
        t = t.reshape(t.shape[0], -1)
        a = jnp.sum(p * t, 1)
        b = jnp.sum(p * p, 1) + 0.001
        c = jnp.sum(t * t, 1) + 0.001
        return jnp.mean(1.0 - 2.0 * a / (b + c))

    def _ref_kl(student, teacher):
        q = jax.nn.softmax(teacher, axis=1)
        logp = jax.nn.log_softmax(student, axis=1)
        return jnp.mean(q * (jnp.log(q) - logp))

    ref_dice = _ref_dice(seg, label, cfg['num_classes'])
    ref_att = (sum(_ref_kl(h, h_att[-1]) for h in h_att[:-1])
               + sum(_ref_kl(w, w_att[-1]) for w in w_att[:-1]))
    ref_bce = jnp.mean(jnp.maximum(exist_logits, 0.0) - exist_logits * exist_labels
                       + jnp.log1p(jnp.exp(-jnp.abs(exist_logits))))
    ref_loss = (ref_dice * cfg['seg_loss_weight'] + ref_dice * 1.5
                + 0.8 * ref_att + 0.6 * ref_bce)

    assert bool(jnp.allclose(ret['loss'], ref_loss, rtol=2e-3, atol=2e-3)), \
        (float(ret['loss']), float(ref_loss))

    print("KERNEL_OK")
</pallas_src>

<mosaic_0001>
module attributes {stable_mosaic.version = 11 : i64} {
  func.func @_dice_kernel(%arg0: i32, %arg1: i32, %arg2: memref<1x4x256xf32, #tpu.memory_space<vmem>>, %arg3: memref<1x1x256xi32, #tpu.memory_space<vmem>>, %arg4: memref<1x3x128xf32, #tpu.memory_space<vmem>>, %arg5: memref<3x256xf32, #tpu.memory_space<vmem>>) attributes {dimension_semantics = [#tpu.dimension_semantics<parallel>, #tpu.dimension_semantics<arbitrary>], iteration_bounds = array<i64: 2, 1>, scalar_prefetch = 0 : i64, scratch_operands = 1 : i64, tpu.core_type = #tpu.core_type<tc>, window_params = [{transform_indices = @transform_0, window_bounds = array<i64: 1, 4, 256>}, {transform_indices = @transform_1, window_bounds = array<i64: 1, 1, 256>}, {transform_indices = @transform_2, window_bounds = array<i64: 1, 3, 128>}]} {
    %c0_i32 = arith.constant 0 : i32
    %0 = arith.cmpi eq, %arg1, %c0_i32 : i32
    %1 = arith.extui %0 : i1 to i32
    %c0_i32_0 = arith.constant 0 : i32
    %2 = arith.cmpi ne, %1, %c0_i32_0 : i32
    scf.if %2 {
      %cst_20 = arith.constant 0.000000e+00 : f32
      %48 = vector.broadcast %cst_20 : f32 to vector<3x256xf32>
      %c0_21 = arith.constant 0 : index
      %c0_22 = arith.constant 0 : index
      %49 = vector.load %arg5[%c0_21, %c0_22] : memref<3x256xf32, #tpu.memory_space<vmem>>, vector<3x256xf32>
      tpu.vector_store %arg5[%c0_21, %c0_22], %48 {strides = array<i32>} : memref<3x256xf32, #tpu.memory_space<vmem>>, vector<3x256xf32>,
    } else {
    }
    %c0 = arith.constant 0 : index
    %c0_1 = arith.constant 0 : index
    %c0_2 = arith.constant 0 : index
    %3 = vector.load %arg2[%c0, %c0_1, %c0_2] : memref<1x4x256xf32, #tpu.memory_space<vmem>>, vector<1x4x256xf32>
    %4 = vector.shape_cast %3 : vector<1x4x256xf32> to vector<4x256xf32>
    %c0_3 = arith.constant 0 : index
    %c0_4 = arith.constant 0 : index
    %c0_5 = arith.constant 0 : index
    %5 = vector.load %arg3[%c0_3, %c0_4, %c0_5] : memref<1x1x256xi32, #tpu.memory_space<vmem>>, vector<1x1x256xi32>
    %6 = vector.shape_cast %5 : vector<1x1x256xi32> to vector<1x256xi32>
    %cst = arith.constant dense<0xFF800000> : vector<256xf32>
    %7 = vector.multi_reduction <maximumf>, %4, %cst [0] : vector<4x256xf32> to vector<256xf32>
    %8 = vector.shape_cast %7 : vector<256xf32> to vector<1x256xf32>
    %9 = vector.broadcast %8 : vector<1x256xf32> to vector<4x256xf32>
    %10 = arith.subf %4, %9 : vector<4x256xf32>
    %11 = math.exp %10 : vector<4x256xf32>
    %cst_6 = arith.constant dense<0.000000e+00> : vector<256xf32>
    %12 = vector.multi_reduction <add>, %11, %cst_6 [0] : vector<4x256xf32> to vector<256xf32>
    %13 = vector.shape_cast %12 : vector<256xf32> to vector<1x256xf32>
    %14 = tpu.reciprocal %13 {approx = true} : vector<1x256xf32> -> vector<1x256xf32>
    %15 = vector.broadcast %14 : vector<1x256xf32> to vector<4x256xf32>
    %16 = arith.mulf %11, %15 : vector<4x256xf32>
    %17 = tpu.iota {dimensions = array<i32: 0>} : vector<4x256xi32>
    %18 = vector.broadcast %6 : vector<1x256xi32> to vector<4x256xi32>
    %19 = arith.cmpi eq, %17, %18 : vector<4x256xi32>
    %c0_i32_7 = arith.constant 0 : i32
    %20 = vector.broadcast %c0_i32_7 : i32 to vector<4x256xi32>
    %21 = arith.cmpi sgt, %17, %20 : vector<4x256xi32>
    %22 = arith.andi %19, %21 : vector<4x256xi1>
    %cst_8 = arith.constant 1.000000e+00 : f32
    %cst_9 = arith.constant 0.000000e+00 : f32
    %23 = vector.broadcast %cst_8 : f32 to vector<4x256xf32>
    %24 = vector.broadcast %cst_9 : f32 to vector<4x256xf32>
    %25 = arith.select %22, %23, %24 : vector<4x256xi1>, vector<4x256xf32>
    %c0_i32_10 = arith.constant 0 : i32
    %26 = vector.broadcast %c0_i32_10 : i32 to vector<4x256xi32>
    %27 = arith.cmpi sgt, %17, %26 : vector<4x256xi32>
    %28 = arith.extui %27 : vector<4x256xi1> to vector<4x256xi32>
    %29 = arith.sitofp %28 : vector<4x256xi32> to vector<4x256xf32>
    %30 = arith.mulf %16, %25 : vector<4x256xf32>
    %cst_11 = arith.constant dense<0.000000e+00> : vector<256xf32>
    %31 = vector.multi_reduction <add>, %30, %cst_11 [0] : vector<4x256xf32> to vector<256xf32>
    %32 = vector.shape_cast %31 : vector<256xf32> to vector<1x256xf32>
    %33 = arith.mulf %16, %16 : vector<4x256xf32>
    %34 = arith.mulf %33, %29 : vector<4x256xf32>
    %cst_12 = arith.constant dense<0.000000e+00> : vector<256xf32>
    %35 = vector.multi_reduction <add>, %34, %cst_12 [0] : vector<4x256xf32> to vector<256xf32>
    %36 = vector.shape_cast %35 : vector<256xf32> to vector<1x256xf32>
    %c0_i32_13 = arith.constant 0 : i32
    %37 = vector.broadcast %c0_i32_13 : i32 to vector<1x256xi32>
    %38 = arith.cmpi sgt, %6, %37 : vector<1x256xi32>
    %39 = arith.extui %38 : vector<1x256xi1> to vector<1x256xi32>
    %40 = arith.sitofp %39 : vector<1x256xi32> to vector<1x256xf32>
    %c0_14 = arith.constant 0 : index
    %c0_15 = arith.constant 0 : index
    %41 = vector.load %arg5[%c0_14, %c0_15] : memref<3x256xf32, #tpu.memory_space<vmem>>, vector<3x256xf32>
    %42 = tpu.concatenate %32, %36, %40 in 0 : vector<1x256xf32>, vector<1x256xf32>, vector<1x256xf32> -> vector<3x256xf32>
    %43 = arith.addf %41, %42 : vector<3x256xf32>
    %c0_16 = arith.constant 0 : index
    %c0_17 = arith.constant 0 : index
    %44 = vector.load %arg5[%c0_16, %c0_17] : memref<3x256xf32, #tpu.memory_space<vmem>>, vector<3x256xf32>
    tpu.vector_store %arg5[%c0_16, %c0_17], %43 {strides = array<i32>} : memref<3x256xf32, #tpu.memory_space<vmem>>, vector<3x256xf32>,
    %c0_i32_18 = arith.constant 0 : i32
    %45 = arith.cmpi eq, %arg1, %c0_i32_18 : i32
    %46 = arith.extui %45 : i1 to i32
    %c0_i32_19 = arith.constant 0 : i32
    %47 = arith.cmpi ne, %46, %c0_i32_19 : i32
    scf.if %47 {
      %c0_20 = arith.constant 0 : index
      %c0_21 = arith.constant 0 : index
      %48 = vector.load %arg5[%c0_20, %c0_21] : memref<3x256xf32, #tpu.memory_space<vmem>>, vector<3x256xf32>
      %cst_22 = arith.constant dense<0.000000e+00> : vector<3xf32>
      %49 = vector.multi_reduction <add>, %48, %cst_22 [1] : vector<3x256xf32> to vector<3xf32>
      %50 = vector.shape_cast %49 : vector<3xf32> to vector<3x1xf32>
      %51 = vector.shape_cast %50 : vector<3x1xf32> to vector<1x3x1xf32>
      %52 = vector.shape_cast %51 : vector<1x3x1xf32> to vector<1x3x1xf32>
      %53 = vector.broadcast %52 : vector<1x3x1xf32> to vector<1x3x128xf32>
      %c0_23 = arith.constant 0 : index
      %c0_24 = arith.constant 0 : index
      %c0_25 = arith.constant 0 : index
      %54 = vector.load %arg4[%c0_23, %c0_24, %c0_25] : memref<1x3x128xf32, #tpu.memory_space<vmem>>, vector<1x3x128xf32>
      tpu.vector_store %arg4[%c0_23, %c0_24, %c0_25], %53 {strides = array<i32>} : memref<1x3x128xf32, #tpu.memory_space<vmem>>, vector<1x3x128xf32>,
    } else {
    }
    return
  }
  func.func @transform_0(%arg0: i32, %arg1: i32) -> (i32, i32, i32) {
    %c0_i32 = arith.constant 0 : i32
    %c0_i32_0 = arith.constant 0 : i32
    return %arg0, %c0_i32, %arg1 : i32, i32, i32
  }
  func.func @transform_1(%arg0: i32, %arg1: i32) -> (i32, i32, i32) {
    %c0_i32 = arith.constant 0 : i32
    %c0_i32_0 = arith.constant 0 : i32
    return %arg0, %c0_i32, %arg1 : i32, i32, i32
  }
  func.func @transform_2(%arg0: i32, %arg1: i32) -> (i32, i32, i32) {
    %c0_i32 = arith.constant 0 : i32
    %c0_i32_0 = arith.constant 0 : i32
    %c0_i32_1 = arith.constant 0 : i32
    return %arg0, %c0_i32, %c0_i32_0 : i32, i32, i32
  }
}

</mosaic_0001>

<bundles_post_ra>
// kernel: tpu_custom_call.1
= control target key start
LH: loop header
LB: loop body
LE: loop exit
PB: predicated region body
PF: predicated region fallthrough
CT: control target
= control target key end

     0   :  { %7 = vsyncpa [#allocation4], 0  ;;  %s907_s0 = inlined_call_operand.hbm [shape: f32[2,4,256], index: 0, kind: input, shape index: {}]   ;;  %s908_s1 = inlined_call_operand.hbm [shape: s32[2,1,256], index: 1, kind: input, shape index: {}]   ;;  %s909_s2 = inlined_call_operand.vmem [shape: f32[2,3,128], index: 2, kind: output, shape index: {}]  }
   0x1   :  { %9 = vsyncpa [#allocation4 + $0x1], 0 }
   0x2   :  { %10 = vsyncpa [#allocation6], 0 }
   0x3   :  { %12 = vsyncpa [#allocation6 + $0x1], 0  ;;  %s713_s9 = smov 0   ;;  %s715_s10 = smov 0  }
   0x4   :  { %s717_s11 = smov 0   ;;  %s719_s12 = smov 0  }
   0x5   :  { %s721_s13 = smov 0   ;;  %s723_s14 = smov 0  }
   0x6 LB: > { %s488_s15 = sadd.s32 4294967295, %s692_s14   ;;  %s30_s16 = sadd.s32 1, %s688_s13  ;;  %s692_s14 = sphi %s723_s14, %s18_s14   ;;  %s688_s13 = sphi %s721_s13, %s923_s13   ;;  %s684_s12 = sphi %s719_s12, %s922_s12   ;;  %s680_s11 = sphi %s717_s11, %s921_s11   ;;  %s676_s10 = sphi %s715_s10, %s920_s10   ;;  %s672_s9 = sphi %s713_s9, %s919_s9  }
   0x7   : > { %p32_p0 = scmp.ge.s32.totalorder %s30_s16, 2  ;;  %s39_s17 = sadd.s32 1, %s680_s11 }
   0x8   : > { %p46_p1 = scmp.ne.s32.totalorder %s680_s11, %s676_s10  ;;  %p47_p2 = scmp.eq.s32.totalorder %s692_s14, 0 }
   0x9   : > { %s925_s16 = smov (%p32_p0, %s30_s16), 0  ;;  %p52_p4 = scmp.ne.s32.totalorder %s676_s10, %s672_s9 }
   0xa   : > { %p749_p3 = por %p47_p2, %p46_p1  ;;  %s34_s19 = ssub.s32 %s688_s13, %s925_s16 }
   0xb   : > { %p53_p5 = scmp.eq.s32.totalorder %s488_s15, 0  ;;  %p37_p6 = scmp.eq.s32.totalorder %s34_s19, 0 }
   0xc   : > { %p519_p8 = scmp.lt.s32.totalorder %s692_s14, 2  ;;  %s765_s22 = sand.u32 1, %s680_s11  }
   0xd   : > { %p756_p7 = por %p53_p5, %p52_p4  ;;  %s506_s23 = sshll.u32 %s688_s13, 7 }
   0xe   : > { %s762_s21 = scalar_select %p37_p6, %s680_s11, %s39_s17  }
   0xf   : > { %s912_s20 = scalar_select %p756_p7, 1, 0 }
  0x10   : > { %s492_s24 = sshll.u32 %s765_s22, 3  ;;  %s772_s27 = scalar_lea.hbm %s907_s0, %s506_s23 }
  0x11   : > { %s134_s28 = scalar_lea.vmem [#allocation3], %s492_s24  ;;  %p776_p9 = pnand %p519_p8, %p749_p3 }
  0x12   : > { %s144_s29 = sshll.u32 %s134_s28, 4  ;;  %s131_s3 = scalar_lea.sflag [#allocation4], %s765_s22  ;;  %s780_s29 = int_to_ptr.vmem [resolvable:$true] %s144_s29 }
  0x13   : > { %s578_s4 = scalar_lea.hbm %s772_s27, 128  ;;  %p580_p13 = pneg %p776_p9 }
  0x14   : > { %p579_p12 = scmp.ne.s32.totalorder %s772_s27, %s578_s4  ;;  %s583_s7 = scalar_lea.hbm %s907_s0, 256 }
  0x15   : > { %p584_p2 = scmp.lt.u32.totalorder %s772_s27, %s907_s0  ;;  %p585_p3 = scmp.lt.u32.totalorder %s583_s7, %s578_s4 }
  0x16   : > { %p581_p0 = pnand %p580_p13, %p579_p12  ;;  %p587_p5 = scmp.lt.u32.totalorder %s578_s4, %s772_s27 }
  0x17   : > { %p586_p4 = por %p585_p3, %p584_p2 }
  0x18   : > { %p582_p1 = pneg %p581_p0 }
  0x19   : > { %p588_p6 = por %p587_p5, %p586_p4 }
  0x1b   : > { %p589_p8 = pnand %p588_p6, %p582_p1 }
  0x1d   : > { %592 = shalt.err (!%p589_p8)
}
  0x1e   : > { %s593_s15 = scalar_lea.vmem %s780_s29, 128  ;;  %s694_s17 = smov [#allocation3]  }
  0x1f   : > { %p594_p12 = scmp.ne.s32.totalorder %s780_s29, %s593_s15  ;;  %s598_s18 = sshll.u32 %s694_s17, 4  ;;  %s599_s18 = int_to_ptr.vmem [resolvable:$false] %s598_s18 }
  0x20   : > { %s600_s19 = scalar_lea.vmem %s599_s18, 256  ;;  %p601_p11 = scmp.lt.s32.totalorder %s780_s29, %s599_s18 }
  0x21   : > { %p596_p0 = pnand %p594_p12, %p580_p13  ;;  %p602_p2 = scmp.lt.s32.totalorder %s600_s19, %s593_s15 }
  0x23   : > { %p597_p10 = pneg %p596_p0  ;;  %p603_p3 = por %p602_p2, %p601_p11 }
  0x25   : > { %p604_p4 = pnand %p603_p3, %p597_p10 }
  0x27   : > { %607 = shalt.err (!%p604_p4)
}
  0x28   : > { %515 = dma.hbm_to_vmem [thread:$0]  (!%p776_p9), %s772_s27, 128, %s780_s29, %s131_s3  }
  0x29   : > { %p914_p1 = scmp.lt.s32.totalorder %s692_s14, 3  ;;  %p915_p5 = scmp.ge.s32.totalorder %s692_s14, 1 }
  0x2a   : > { %s495_s24 = sshll.u32 %s765_s22, 1  ;;  %s507_s25 = sshll.u32 %s688_s13, 5 }
  0x2b   : > { %p814_p6 = pnand %p915_p5, %p914_p1  ;;  %s823_s4 = scalar_lea.hbm %s908_s1, %s507_s25 }
  0x2c   : > { %s155_s5 = scalar_lea.vmem [#allocation5], %s495_s24  ;;  %s152_s27 = scalar_lea.sflag [#allocation6], %s765_s22 }
  0x2d   : > { %s916_s23 = scalar_select %p814_p6, 1, 0 }
  0x2e   : > { %s165_s6 = sshll.u32 %s155_s5, 4  ;;  %s608_s29 = scalar_lea.hbm %s823_s4, 32  ;;  %s166_s6 = int_to_ptr.vmem [resolvable:$true] %s165_s6 }
  0x2f   : > { %p609_p10 = scmp.ne.s32.totalorder %s823_s4, %s608_s29  ;;  %s613_s8 = scalar_lea.hbm %s908_s1, 64 }
  0x30   : > { %p614_p12 = scmp.lt.u32.totalorder %s823_s4, %s908_s1  ;;  %p615_p0 = scmp.lt.u32.totalorder %s613_s8, %s608_s29 }
  0x31   : > { %p611_p11 = pnand %p609_p10, %p580_p13  ;;  %p617_p3 = scmp.lt.u32.totalorder %s608_s29, %s823_s4 }
  0x32   : > { %p616_p2 = por %p615_p0, %p614_p12 }
  0x33   : > { %p612_p8 = pneg %p611_p11 }
  0x34   : > { %p618_p4 = por %p617_p3, %p616_p2 }
  0x36   : > { %p619_p1 = pnand %p618_p4, %p612_p8 }
  0x38   : > { %622 = shalt.err (!%p619_p1)
}
  0x39   : > { %s623_s22 = scalar_lea.vmem %s166_s6, 32  ;;  %s695_s17 = smov [#allocation5]  }
  0x3a   : > { %p624_p5 = scmp.ne.s32.totalorder %s166_s6, %s623_s22  ;;  %s628_s18 = sshll.u32 %s695_s17, 4  ;;  %s629_s18 = int_to_ptr.vmem [resolvable:$false] %s628_s18 }
  0x3b   : > { %s630_s19 = scalar_lea.vmem %s629_s18, 64  ;;  %p631_p7 = scmp.lt.s32.totalorder %s166_s6, %s629_s18 }
  0x3c   : > { %p626_p10 = pnand %p624_p5, %p580_p13  ;;  %p632_p6 = scmp.lt.s32.totalorder %s630_s19, %s623_s22 }
  0x3e   : > { %p627_p11 = pneg %p626_p10  ;;  %p633_p0 = por %p632_p6, %p631_p7 }
  0x40   : > { %p634_p12 = pnand %p633_p0, %p627_p11 }
  0x42   : > { %637 = shalt.err (!%p634_p12)
}
  0x43   : > { %518 = dma.hbm_to_vmem [thread:$0]  (!%p776_p9), %s823_s4, 32, %s166_s6, %s152_s27  }
  0x44   : > { %p917_p8 = scmp.ne.s32.totalorder %s916_s23, 0 }
  0x45   : > { %s176_s24 = sand.u32 (!%p917_p8), 1, %s676_s10   ;;  %p918_p13 = scmp.ne.s32.totalorder (!%p917_p8), %s912_s20, 0 }
  0x46   : > { %174 = sbr.rel (%p917_p8) target bundleno = 325 (0x145), region = 28  ;;  %s499_s25 = sshll.u32 (!%p917_p8), %s176_s24, 3 }
  0x47   : > { %s177_s26 = scalar_lea.sflag (!%p917_p8), [#allocation4], %s176_s24  ;;  %s180_s28 = scalar_lea.vmem (!%p917_p8), [#allocation3], %s499_s25 }
  0x4d   : > { %663 = dma.done.wait (%p918_p13), %s177_s26, 128  }
  0x4e   : > { %665 = vsyncadd (%p918_p13), %s177_s26, 4294967168  ;;  %s500_s5 = sshll.u32 %s176_s24, 1  ;;  %s186_s29 = scalar_lea.sflag [#allocation6], %s176_s24 }
  0x4f   : > { %s852_s30 = scalar_lea.vmem [#allocation5], %s500_s5 }
  0x50   : > { %667 = dma.done.wait (%p918_p13), %s186_s29, 32  }
  0x51   : > { %669 = vsyncadd (%p918_p13), %s186_s29, 4294967264  ;;  %v696_v0 = vmov 0.0   ;;  %vm230_vm0 = vcmask 1043456   ;;  %v225_v1 = vld [vmem:[%s180_s28] sm:$0xff]  ;;  %v276_v23 = vlaneseq  ;;  %v226_v34 = vld [vmem:[%s852_s30] sm:$0x3] }
  0x52   : > { %224 = vst [vmem:[#allocation2] sm:$0x77] %v696_v0  ;;  %v228_v2 = vcombine.high %v225_v1, %v225_v1  ;;  %v231_v3 = vsel %vm230_vm0, %v225_v1, -inf  ;;  %v697_v43 = vmov 839922192   ;;  %vm345_vm6 = vcmp.gt.s32.totalorder %v226_v34, 0 }
  0x53   : > { %v232_v4 = vrot.slane %v231_v3, 4  ;;  %v863_v28 = vshrl.u32 %v276_v23, 7  ;;  %v320_v44 = vunpack.c.l.s4 %v697_v43  ;;  %vm360_vm7 = vcmask 1040384   ;;  %p216_p7 = scmp.lt.s32.totalorder %s684_s12, 1 }
  0x54   : > { %v238_v5 = vsel %vm230_vm0, %v228_v2, -inf  ;;  %vm363_vm8 = vcmask 1041408   ;;  %vm379_vm9 = vcmask 1042432  }
  0x55   : > { %v233_v6 = vmax.f32 %v231_v3, %v232_v4  ;;  %v239_v7 = vrot.slane %v238_v5, 4  ;;  %v280_v33 = vsub.s32 0, %v863_v28  ;;  %v284_v37 = vsub.s32 1, %v863_v28  ;;  %s927_s12 = smov (!%p216_p7, %s684_s12), 1 }
  0x56   : > { %vm288_vm2 = vcmp.gt.s32.totalorder %v863_v28, 0  ;;  %v321_v45 = vunpack.c.0.s8 %v320_v44  ;;  %s501_s20 = sshll.u32 %s927_s12, 2 }
  0x57   : > { %v234_v8 = vrot.slane %v233_v6, 2  ;;  %v240_v9 = vmax.f32 %v238_v5, %v239_v7  ;;  %v281_v40 = vrot.slane %v226_v34, %v280_v33  ;;  %v285_v42 = vrot.slane %v226_v34, %v284_v37  ;;  %s219_s6 = scalar_lea.vmem %s909_s2, %s501_s20 }
  0x58   : > { %v324_v49 = vsub.s32 %v321_v45, %v863_v28  ;;  %v502_v51 = vsel %vm288_vm2, 1.0, %v696_v0 }
  0x59   : > { %v235_v10 = vmax.f32 %v233_v6, %v234_v8  ;;  %v241_v11 = vrot.slane %v240_v9, 2  ;;  %vm286_vm1 = vcmp.eq.s32.totalorder %v863_v28, %v281_v40  ;;  %vm287_vm3 = vcmp.eq.s32.totalorder %v863_v28, %v285_v42 }
  0x5a   : > { %vm289_vm4 = vmand %vm286_vm1, %vm288_vm2  ;;  %v325_v55 = vrot.slane %v502_v51, %v324_v49 }
  0x5b   : > { %v236_v12 = vrot.slane %v235_v10, 1  ;;  %v242_v13 = vmax.f32 %v240_v9, %v241_v11  ;;  %vm290_vm5 = vmand %vm287_vm3, %vm288_vm2  ;;  %v291_v47 = vsel %vm289_vm4, 1.0, %v696_v0 }
  0x5c   : > { %v292_v48 = vsel %vm290_vm5, 1.0, %v696_v0 }
  0x5d   : > { %v237_v14 = vmax.f32 %v235_v10, %v236_v12  ;;  %v243_v15 = vrot.slane %v242_v13, 1  ;;  %v297_v53 = vcombine.low %v291_v47, %v292_v48 }
  0x5f   : > { %v244_v16 = vmax.f32 %v242_v13, %v243_v15 }
  0x61   : > { %v247_v17 = vcombine.low %v237_v14, %v244_v16  ;;  %v503_v14 = vsel %vm345_vm6, 1.0, %v696_v0 }
  0x62   : > { %v353_v23 = vrot.slane %v503_v14, %v280_v33 }
  0x63   : > { %v249_v18 = vsub.f32 %v225_v1, %v247_v17 }
  0x65   : > { %v250_v19 = vmul.f32 1.442695, %v249_v18 }
  0x67   : > { %572 = vpow2.f32 %v250_v19 }
  0x71   : > { %v573_v20 = vpop.eup %572 }
  0x72   : > { %v253_v21 = vcombine.high %v573_v20, %v573_v20  ;;  %v255_v22 = vsel %vm230_vm0, %v573_v20, 0.0 }
  0x73   : > { %v256_v24 = vrot.slane %v255_v22, 4 }
  0x74   : > { %v262_v25 = vsel %vm230_vm0, %v253_v21, 0.0 }
  0x75   : > { %v257_v26 = vadd.f32 %v256_v24, %v255_v22  ;;  %v263_v27 = vrot.slane %v262_v25, 4 }
  0x77   : > { %v258_v29 = vrot.slane %v257_v26, 2  ;;  %v264_v30 = vadd.f32 %v263_v27, %v262_v25  ;;  %v357_v27 = vrot.slane %v503_v14, %v284_v37 }
  0x79   : > { %v259_v31 = vadd.f32 %v258_v29, %v257_v26  ;;  %v265_v32 = vrot.slane %v264_v30, 2 }
  0x7b   : > { %v260_v35 = vrot.slane %v259_v31, 1  ;;  %v266_v36 = vadd.f32 %v265_v32, %v264_v30  ;;  %v348_v32 = vld [vmem:[#allocation2] sm:$0x77] }
  0x7d   : > { %v261_v38 = vadd.f32 %v260_v35, %v259_v31  ;;  %v267_v39 = vrot.slane %v266_v36, 1 }
  0x7f   : > { %v268_v41 = vadd.f32 %v267_v39, %v266_v36  ;;  %574 = vrcp.f32 %v261_v38 }
  0x81   : > { %576 = vrcp.f32 %v268_v41 }
  0x89   : > { %v575_v46 = vpop.eup %574 }
  0x8b   : > { %v577_v50 = vpop.eup %576 }
  0x8c   : > { %v273_v52 = vcombine.low %v575_v46, %v577_v50 }
  0x8e   : > { %v275_v54 = vmul.f32 %v573_v20, %v273_v52 }
  0x90   : > { %v299_v56 = vmul.f32 %v297_v53, %v275_v54  ;;  %v317_v57 = vmul.f32 %v275_v54, %v275_v54 }
  0x92   : > { %v301_v58 = vcombine.high %v299_v56, %v299_v56  ;;  %v303_v59 = vsel %vm230_vm0, %v299_v56, 0.0  ;;  %v327_v60 = vmul.f32 %v325_v55, %v317_v57 }
  0x93   : > { %v304_v61 = vrot.slane %v303_v59, 4 }
  0x94   : > { %v310_v62 = vsel %vm230_vm0, %v301_v58, 0.0  ;;  %v329_v63 = vcombine.high %v327_v60, %v327_v60  ;;  %v331_v1 = vsel %vm230_vm0, %v327_v60, 0.0 }
  0x95   : > { %v305_v2 = vadd.f32 %v304_v61, %v303_v59  ;;  %v311_v3 = vrot.slane %v310_v62, 4  ;;  %v332_v4 = vrot.slane %v331_v1, 4 }
  0x96   : > { %v338_v5 = vsel %vm230_vm0, %v329_v63, 0.0 }
  0x97   : > { %v306_v6 = vrot.slane %v305_v2, 2  ;;  %v312_v7 = vadd.f32 %v311_v3, %v310_v62  ;;  %v333_v8 = vadd.f32 %v332_v4, %v331_v1  ;;  %v339_v9 = vrot.slane %v338_v5, 4 }
  0x99   : > { %v307_v10 = vadd.f32 %v306_v6, %v305_v2  ;;  %v313_v11 = vrot.slane %v312_v7, 2  ;;  %v334_v12 = vrot.slane %v333_v8, 2  ;;  %v340_v13 = vadd.f32 %v339_v9, %v338_v5 }
  0x9b   : > { %v308_v15 = vrot.slane %v307_v10, 1  ;;  %v314_v16 = vadd.f32 %v313_v11, %v312_v7  ;;  %v335_v17 = vadd.f32 %v334_v12, %v333_v8  ;;  %v341_v18 = vrot.slane %v340_v13, 2 }
  0x9d   : > { %v309_v19 = vadd.f32 %v308_v15, %v307_v10  ;;  %v315_v20 = vrot.slane %v314_v16, 1  ;;  %v336_v21 = vrot.slane %v335_v17, 1  ;;  %v342_v22 = vadd.f32 %v341_v18, %v340_v13 }
  0x9f   : > { %v316_v24 = vadd.f32 %v315_v20, %v314_v16  ;;  %v337_v25 = vadd.f32 %v336_v21, %v335_v17  ;;  %v343_v26 = vrot.slane %v342_v22, 1 }
  0xa1   : > { %v344_v29 = vadd.f32 %v343_v26, %v342_v22  ;;  %v361_v0 = vsel %vm360_vm7, %v309_v19, %v337_v25 }
  0xa2   : > { %v364_v30 = vsel %vm363_vm8, %v361_v0, %v353_v23 }
  0xa3   : > { %v362_v31 = vsel %vm360_vm7, %v316_v24, %v344_v29 }
  0xa4   : > { %v365_v34 = vsel %vm363_vm8, %v362_v31, %v357_v27 }
  0xa5   : > { %v368_v35 = vcombine.low %v364_v30, %v365_v34 }
  0xa7   : > { %v370_v36 = vadd.f32 %v368_v35, %v348_v32 }
  0xa9   : > { %371 = vst [vmem:[#allocation2] sm:$0x77] %v370_v36 }
  0xb0   : > { %v375_v33 = vld [vmem:[#allocation2] sm:$0x77] }
  0xb1   : > { %v377_v38 = vcombine.high %v375_v33, %v375_v33  ;;  %v380_v39 = vsel %vm379_vm9, %v375_v33, 0.0 }
  0xb3   : > { %v381_v40 = vsel %vm379_vm9, %v377_v38, 0.0 }
  0xb4   : > { %v382_v41 = vadd.f32 %v381_v40, %v380_v39 }
  0xb6   : > { %383 = vadd.xlane.f32.xlu0 %v382_v41 }
 0x143   : > { %v384_v28 = vpop.xlane.xlu0 %383 }
 0x144   : > { %385 = vst [vmem:[%s219_s6] sm:$0x7] %v384_v28 }
 0x145 PF: > { %s18_s14 = sadd.s32 1, %s692_s14   ;;  %s919_s9 = smov %s676_s10 }
 0x146   : > { %p15_p9 = scmp.ge.s32.totalorder %s18_s14, 4   ;;  %s920_s10 = smov %s680_s11 }
 0x147   : > { %s921_s11 = smov %s762_s21  ;;  %s922_s12 = smov %s688_s13 }
 0x148   : > { %s923_s13 = smov %s925_s16  ;;  %17 = sbr.rel (!%p15_p9) target bundleno = 6 (0x6), region = 89 }
 0x14f   :  { %405 = vsyncpa [#allocation4], 1 }
 0x150   :  { %407 = vsyncpa [#allocation4 + $0x1], 1 }
 0x151   :  { %408 = vsyncpa [#allocation6], 1 }
 0x152   :  { %410 = vsyncpa [#allocation6 + $0x1], 1 }

</bundles_post_ra>
